<compile_context>
chip_gen: v6e
topology: v6e:2x2x1
jax: 0.10.0
libtpu: 0.0.40
codegen_flags: <defaults>
</compile_context>

<pallas_src>
import functools
import math

import jax
import jax.numpy as jnp
from jax.experimental import pallas as pl
from jax.experimental.pallas import tpu as pltpu

DIM_MODEL = 32
NUM_HEADS = 4
HEAD_DIM = DIM_MODEL // NUM_HEADS
DROPOUT_RATE = 0.1  # identity at inference; kept only to mirror __init__


def _self_attention_kernel(qkv_ref, wqk_ref, bq_ref, wlt_ref, bl_ref, o_ref, *,
                           block_batch, seq_len, lane_dense):
    rows = block_batch * seq_len
    D, H, Dh = DIM_MODEL, NUM_HEADS, HEAD_DIM

    x = qkv_ref[...]                    # (3*rows, D): [q-rows; k-rows; v-rows]
    wqk = wqk_ref[...]                  # (D, 2D): [wq.T | wk.T]
    bq = bq_ref[...]                    # (1, D)
    wlt = wlt_ref[...]                  # (D, D) = wl.T
    bl = bl_ref[...]                    # (1, D)

    # ---- Fused Q/K/V projections: ONE MXU matmul ---------------------------
    # Lanes [0, D) of `proj` hold x @ wq.T, lanes [D, 2D) hold x @ wk.T.
    # K and V both use wk (reference quirk: v = self.wk(v)).
    proj = jnp.dot(x, wqk, preferred_element_type=jnp.float32)   # (3*rows, 2D)
    Q = proj[:rows, :D] + bq
    K = proj[rows:2 * rows, D:]
    V = proj[2 * rows:, D:]

    scale = 1.0 / math.sqrt(Dh)

    def head_view(t, h):
        # Static 8-lane slice, then layout-preserving split of the row axis.
        lo = h * Dh
        return t[:, lo:lo + Dh].reshape(block_batch, seq_len, Dh)

    # ---- Per-head scaled scores, batched over this block's batch elems -----
    # NOTE: the shared-last-dim contraction implies a K-operand transpose; it
    # lands on the XLU, which has slack here (MXU/VPU carry the real work).
    scores = []
    for h in range(H):
        s = jnp.einsum("bqd,bkd->bqk", head_view(Q, h), head_view(K, h),
                       preferred_element_type=jnp.float32)
        scores.append(s * scale)

    # ---- Softmax over the HEAD axis -----------------------------------------
    # torch.nn.functional.softmax called without `dim` on a 4-D (B,H,Sq,Sk)
    # tensor normalizes over dim=1 (heads); reproduce that here.
    m = scores[0]
    for h in range(1, H):
        m = jnp.maximum(m, scores[h])
    denom = None
    for h in range(H):
        scores[h] = jnp.exp(scores[h] - m)      # overwrite in place: only H
        denom = scores[h] if denom is None else denom + scores[h]  # temps live
    # EUP approx reciprocal (separate VLIW slot) + one Newton step on the VPU:
    # ~full f32 accuracy at a fraction of the exact-divide sequence.
    inv = pl.reciprocal(denom, approx=True)
    inv = inv * (2.0 - denom * inv)
    # dropout == identity (eval-mode forward)
    # TODO(synk): training-mode dropout on the attention probs is not implemented.

    # ---- Context + output linear (head concat folded into the linear) ------
    # out = sum_h (probs_h @ V_h) @ wl.T[h*Dh:(h+1)*Dh, :] + bl
    out = None
    for h in range(H):
        p = scores[h] * inv                                     # (bt, S, S)
        ctx = jnp.einsum("bqk,bkd->bqd", p, head_view(V, h),
                         preferred_element_type=jnp.float32)
        part = jnp.dot(ctx.reshape(rows, Dh), wlt[h * Dh:(h + 1) * Dh, :],
                       preferred_element_type=jnp.float32)
        out = part if out is None else out + part
    out = out + bl                                              # (rows, D)

    if lane_dense:
        # Pack 4 consecutive 32-lane rows into one 128-lane row (pure row-major
        # regrouping) so the store is an unmasked dense vst and the HBM
        # writeback DMA is lane-dense instead of 32-of-128-lane padded.
        o_ref[...] = out.reshape(rows // 4, 4 * D).astype(o_ref.dtype)
    else:
        o_ref[...] = out.astype(o_ref.dtype)


def _num_tensorcores():
    """Best-effort TensorCores per chip (v7x and megacore chips have 2)."""
    try:
        kind = (jax.devices()[0].device_kind or "").lower()
    except Exception:
        return 1
    if "v7" in kind or "v5p" in kind or kind.strip() == "tpu v4":
        return 2
    return 1


def _choose_num_steps(batch, seq, num_cores, max_rows=4096):
    """Grid length: as few (fat) steps as legal, a multiple of the TC count.

    Multi-step blocks must satisfy the (8,128) BlockSpec divisibility rules:
    the stacked (3*rows, 32) input needs rows % 8 == 0 and the lane-dense
    (rows//4, 128) output needs rows % 32 == 0; a single step (block == full
    array) is always legal.  `max_rows` only bounds the in-kernel (bt, S, S)
    score temporaries — VMEM itself is a non-issue at D=32 on every chip.
    """
    max_rows = max(seq, min(max_rows, (2 ** 19) // max(seq, 1)))

    def legal(n):
        return batch % n == 0 and (n == 1 or ((batch // n) * seq) % 32 == 0)

    legal_ns = [n for n in range(1, batch + 1) if legal(n)]
    for want in (num_cores, 1):          # prefer a multiple of the TC count
        picks = [n for n in legal_ns if n % want == 0]
        if not picks:
            continue
        for n in picks:                  # fewest steps whose rows fit the cap
            if (batch // n) * seq <= max_rows:
                return n
        return picks[-1]
    return 1


def self_attention_channel(q, k, v, params, *, num_steps=None):
    """Forward pass of SelfAttentionChannel as a single Pallas TPU kernel."""
    B, S, D = q.shape
    assert D == DIM_MODEL and k.shape == q.shape and v.shape == q.shape

    n = num_steps if num_steps is not None else _choose_num_steps(
        B, S, _num_tensorcores())
    assert B % n == 0
    bt = B // n
    rows = bt * S
    want_lane_dense = (rows % 4 == 0)    # 4 x 32 lanes = one full 128-lane row

    # Host-side prep (layout plumbing, not compute hoisting):
    #   * one stacked [q; k; v] row slab per grid step -> single input DMA,
    #   * fused (wq.T | wk.T) projection weight, pre-transposed wl, 2-D biases.
    q3 = q.reshape(n, rows, D)
    k3 = k.reshape(n, rows, D)
    v3 = v.reshape(n, rows, D)
    qkv = jnp.concatenate([q3, k3, v3], axis=1).reshape(n * 3 * rows, D)
    wqk = jnp.concatenate([params["wq"].T, params["wk"].T], axis=1)   # (D, 2D)
    wlt = params["wl"].T
    bq2 = params["bq"].reshape(1, D)
    bl2 = params["bl"].reshape(1, D)

    in_specs = [
        pl.BlockSpec((3 * rows, D), lambda b: (b, 0)),     # stacked q/k/v rows
        pl.BlockSpec((D, 2 * D), lambda b: (0, 0)),        # [wq.T | wk.T]
        pl.BlockSpec((1, D), lambda b: (0, 0)),            # bq
        pl.BlockSpec((D, D), lambda b: (0, 0)),            # wl.T
        pl.BlockSpec((1, D), lambda b: (0, 0)),            # bl
    ]

    # Advisory cost so XLA schedules this overhead-dominated kernel sensibly.
    flops = (2 * (3 * B * S) * D * (2 * D)                  # fused projections
             + 2 * (2 * B * NUM_HEADS * S * S * HEAD_DIM)   # scores + context
             + 2 * B * S * D * D)                           # output linear
    cost = pl.CostEstimate(flops=flops,
                           transcendentals=B * NUM_HEADS * S * S,
                           bytes_accessed=4 * (4 * B * S * D + 3 * D * D + 2 * D))

    def launch(lane_dense):
        kernel = functools.partial(_self_attention_kernel, block_batch=bt,
                                   seq_len=S, lane_dense=lane_dense)
        if lane_dense:
            out_shape = jax.ShapeDtypeStruct((B * S // 4, 4 * D), q.dtype)
            out_spec = pl.BlockSpec((rows // 4, 4 * D), lambda b: (b, 0))
        else:
            out_shape = jax.ShapeDtypeStruct((B * S, D), q.dtype)
            out_spec = pl.BlockSpec((rows, D), lambda b: (b, 0))
        return pl.pallas_call(
            kernel,
            out_shape=out_shape,
            grid_spec=pltpu.PrefetchScalarGridSpec(
                num_scalar_prefetch=0, grid=(n,),
                in_specs=in_specs, out_specs=out_spec),
            compiler_params=pltpu.CompilerParams(
                dimension_semantics=("parallel",)),
            cost_estimate=cost,
        )(qkv, wqk, bq2, wlt, bl2)

    if want_lane_dense:
        try:
            out2 = jax.block_until_ready(launch(True))
        except Exception:
            # TODO(synk): the (rows,32)->(rows//4,128) repack did not lower on
            # this Mosaic build; fall back to the 32-lane (masked-store) output.
            out2 = launch(False)
    else:
        out2 = launch(False)
    return out2.reshape(B, S, D)


def reference_jax(q, k, v, params):
    """Pure-JAX mirror of the PyTorch forward (incl. its quirks)."""
    B, S, D = q.shape
    H, Dh = NUM_HEADS, HEAD_DIM
    Q = q @ params["wq"].T + params["bq"]
    K = k @ params["wk"].T
    V = v @ params["wk"].T                       # same wk-for-v quirk
    split = lambda x: x.reshape(B, S, H, Dh).transpose(0, 2, 1, 3)
    Qh, Kh, Vh = split(Q), split(K), split(V)
    scores = jnp.einsum("bhqd,bhkd->bhqk", Qh, Kh) / math.sqrt(Dh)
    probs = jax.nn.softmax(scores, axis=1)       # PyTorch implicit dim=1
    ctx = jnp.einsum("bhqk,bhkd->bhqd", probs, Vh)
    ctx = ctx.transpose(0, 2, 1, 3).reshape(B, S, D)
    return ctx @ params["wl"].T + params["bl"]


def init_params(key, dim_model):
    """Deterministic PyTorch-Linear-style init: U(-1/sqrt(in), 1/sqrt(in))."""
    ks = jax.random.split(key, 6)
    bound = 1.0 / math.sqrt(dim_model)
    u = lambda kk, shape: jax.random.uniform(
        kk, shape, jnp.float32, minval=-bound, maxval=bound)
    return {
        "wq": u(ks[0], (dim_model, dim_model)),
        "bq": u(ks[1], (dim_model,)),
        "wk": u(ks[2], (dim_model, dim_model)),
        "wv": u(ks[3], (dim_model, dim_model)),  # created but unused by forward
        "wl": u(ks[4], (dim_model, dim_model)),
        "bl": u(ks[5], (dim_model,)),
    }


if __name__ == "__main__":
    B, S, D = 2, 8, DIM_MODEL

    key = jax.random.PRNGKey(0)
    kq, kk, kv, kp = jax.random.split(key, 4)
    q = jax.random.normal(kq, (B, S, D), jnp.float32)
    k = jax.random.normal(kk, (B, S, D), jnp.float32)
    v = jax.random.normal(kv, (B, S, D), jnp.float32)
    params = init_params(kp, D)

    out = jax.block_until_ready(self_attention_channel(q, k, v, params))
    ref = jax.block_until_ready(reference_jax(q, k, v, params))
    assert out.shape == (B, S, D)
    assert jnp.allclose(out, ref, atol=1e-4, rtol=1e-4), "mismatch vs reference"

    print("KERNEL_OK")
</pallas_src>

<mosaic_0001>
module attributes {stable_mosaic.version = 11 : i64} {
  func.func @_self_attention_kernel(%arg0: i32, %arg1: memref<48x32xf32, #tpu.memory_space<vmem>>, %arg2: memref<32x64xf32, #tpu.memory_space<vmem>>, %arg3: memref<1x32xf32, #tpu.memory_space<vmem>>, %arg4: memref<32x32xf32, #tpu.memory_space<vmem>>, %arg5: memref<1x32xf32, #tpu.memory_space<vmem>>, %arg6: memref<4x128xf32, #tpu.memory_space<vmem>>) attributes {dimension_semantics = [#tpu.dimension_semantics<parallel>], iteration_bounds = array<i64: 1>, scalar_prefetch = 0 : i64, scratch_operands = 0 : i64, tpu.core_type = #tpu.core_type<tc>, window_params = [{transform_indices = @transform_0, window_bounds = array<i64: 48, 32>}, {pipeline_mode = #tpu.pipeline_mode<synchronous>, transform_indices = @transform_1, window_bounds = array<i64: 32, 64>}, {pipeline_mode = #tpu.pipeline_mode<synchronous>, transform_indices = @transform_2, window_bounds = array<i64: 1, 32>}, {pipeline_mode = #tpu.pipeline_mode<synchronous>, transform_indices = @transform_3, window_bounds = array<i64: 32, 32>}, {pipeline_mode = #tpu.pipeline_mode<synchronous>, transform_indices = @transform_4, window_bounds = array<i64: 1, 32>}, {transform_indices = @transform_5, window_bounds = array<i64: 4, 128>}]} {
    %c0 = arith.constant 0 : index
    %c0_0 = arith.constant 0 : index
    %0 = vector.load %arg1[%c0, %c0_0] : memref<48x32xf32, #tpu.memory_space<vmem>>, vector<48x32xf32>
    %c0_1 = arith.constant 0 : index
    %c0_2 = arith.constant 0 : index
    %1 = vector.load %arg2[%c0_1, %c0_2] : memref<32x64xf32, #tpu.memory_space<vmem>>, vector<32x64xf32>
    %c0_3 = arith.constant 0 : index
    %c0_4 = arith.constant 0 : index
    %2 = vector.load %arg3[%c0_3, %c0_4] : memref<1x32xf32, #tpu.memory_space<vmem>>, vector<1x32xf32>
    %c0_5 = arith.constant 0 : index
    %c0_6 = arith.constant 0 : index
    %3 = vector.load %arg4[%c0_5, %c0_6] : memref<32x32xf32, #tpu.memory_space<vmem>>, vector<32x32xf32>
    %c0_7 = arith.constant 0 : index
    %c0_8 = arith.constant 0 : index
    %4 = vector.load %arg5[%c0_7, %c0_8] : memref<1x32xf32, #tpu.memory_space<vmem>>, vector<1x32xf32>
    %cst = arith.constant dense<0.000000e+00> : vector<48x64xf32>
    %5 = tpu.matmul %0, %1, %cst {dimension_numbers = #tpu.dot_dimension_numbers<[1], [0], [0], [1], [0, 0, 1, 1], [], []>} : vector<48x32xf32>, vector<32x64xf32>, vector<48x64xf32> -> vector<48x64xf32>
    %6 = vector.extract_strided_slice %5 {offsets = [0, 0], sizes = [16, 32], strides = [1, 1]} : vector<48x64xf32> to vector<16x32xf32>
    %7 = vector.broadcast %2 : vector<1x32xf32> to vector<16x32xf32>
    %8 = arith.addf %6, %7 : vector<16x32xf32>
    %9 = vector.extract_strided_slice %5 {offsets = [16, 32], sizes = [16, 32], strides = [1, 1]} : vector<48x64xf32> to vector<16x32xf32>
    %10 = vector.extract_strided_slice %5 {offsets = [32, 32], sizes = [16, 32], strides = [1, 1]} : vector<48x64xf32> to vector<16x32xf32>
    %11 = vector.extract_strided_slice %8 {offsets = [0, 0], sizes = [16, 8], strides = [1, 1]} : vector<16x32xf32> to vector<16x8xf32>
    %12 = vector.shape_cast %11 : vector<16x8xf32> to vector<2x8x8xf32>
    %13 = vector.extract_strided_slice %9 {offsets = [0, 0], sizes = [16, 8], strides = [1, 1]} : vector<16x32xf32> to vector<16x8xf32>
    %14 = vector.shape_cast %13 : vector<16x8xf32> to vector<2x8x8xf32>
    "tpu.trace_start"() <{level = 10 : i32, message = "bqd,bkd->bqk"}> : () -> ()
    %cst_9 = arith.constant dense<0.000000e+00> : vector<2x8x8xf32>
    %15 = tpu.matmul %12, %14, %cst_9 {dimension_numbers = #tpu.dot_dimension_numbers<[2], [2], [1], [1], [0, 0, 0, 1, 1, 1], [0], [0]>} : vector<2x8x8xf32>, vector<2x8x8xf32>, vector<2x8x8xf32> -> vector<2x8x8xf32>
    "tpu.trace_stop"() : () -> ()
    %cst_10 = arith.constant 0.353553385 : f32
    %16 = vector.broadcast %cst_10 : f32 to vector<2x8x8xf32>
    %17 = arith.mulf %15, %16 : vector<2x8x8xf32>
    %18 = vector.extract_strided_slice %8 {offsets = [0, 8], sizes = [16, 8], strides = [1, 1]} : vector<16x32xf32> to vector<16x8xf32>
    %19 = vector.shape_cast %18 : vector<16x8xf32> to vector<2x8x8xf32>
    %20 = vector.extract_strided_slice %9 {offsets = [0, 8], sizes = [16, 8], strides = [1, 1]} : vector<16x32xf32> to vector<16x8xf32>
    %21 = vector.shape_cast %20 : vector<16x8xf32> to vector<2x8x8xf32>
    "tpu.trace_start"() <{level = 10 : i32, message = "bqd,bkd->bqk"}> : () -> ()
    %cst_11 = arith.constant dense<0.000000e+00> : vector<2x8x8xf32>
    %22 = tpu.matmul %19, %21, %cst_11 {dimension_numbers = #tpu.dot_dimension_numbers<[2], [2], [1], [1], [0, 0, 0, 1, 1, 1], [0], [0]>} : vector<2x8x8xf32>, vector<2x8x8xf32>, vector<2x8x8xf32> -> vector<2x8x8xf32>
    "tpu.trace_stop"() : () -> ()
    %cst_12 = arith.constant 0.353553385 : f32
    %23 = vector.broadcast %cst_12 : f32 to vector<2x8x8xf32>
    %24 = arith.mulf %22, %23 : vector<2x8x8xf32>
    %25 = vector.extract_strided_slice %8 {offsets = [0, 16], sizes = [16, 8], strides = [1, 1]} : vector<16x32xf32> to vector<16x8xf32>
    %26 = vector.shape_cast %25 : vector<16x8xf32> to vector<2x8x8xf32>
    %27 = vector.extract_strided_slice %9 {offsets = [0, 16], sizes = [16, 8], strides = [1, 1]} : vector<16x32xf32> to vector<16x8xf32>
    %28 = vector.shape_cast %27 : vector<16x8xf32> to vector<2x8x8xf32>
    "tpu.trace_start"() <{level = 10 : i32, message = "bqd,bkd->bqk"}> : () -> ()
    %cst_13 = arith.constant dense<0.000000e+00> : vector<2x8x8xf32>
    %29 = tpu.matmul %26, %28, %cst_13 {dimension_numbers = #tpu.dot_dimension_numbers<[2], [2], [1], [1], [0, 0, 0, 1, 1, 1], [0], [0]>} : vector<2x8x8xf32>, vector<2x8x8xf32>, vector<2x8x8xf32> -> vector<2x8x8xf32>
    "tpu.trace_stop"() : () -> ()
    %cst_14 = arith.constant 0.353553385 : f32
    %30 = vector.broadcast %cst_14 : f32 to vector<2x8x8xf32>
    %31 = arith.mulf %29, %30 : vector<2x8x8xf32>
    %32 = vector.extract_strided_slice %8 {offsets = [0, 24], sizes = [16, 8], strides = [1, 1]} : vector<16x32xf32> to vector<16x8xf32>
    %33 = vector.shape_cast %32 : vector<16x8xf32> to vector<2x8x8xf32>
    %34 = vector.extract_strided_slice %9 {offsets = [0, 24], sizes = [16, 8], strides = [1, 1]} : vector<16x32xf32> to vector<16x8xf32>
    %35 = vector.shape_cast %34 : vector<16x8xf32> to vector<2x8x8xf32>
    "tpu.trace_start"() <{level = 10 : i32, message = "bqd,bkd->bqk"}> : () -> ()
    %cst_15 = arith.constant dense<0.000000e+00> : vector<2x8x8xf32>
    %36 = tpu.matmul %33, %35, %cst_15 {dimension_numbers = #tpu.dot_dimension_numbers<[2], [2], [1], [1], [0, 0, 0, 1, 1, 1], [0], [0]>} : vector<2x8x8xf32>, vector<2x8x8xf32>, vector<2x8x8xf32> -> vector<2x8x8xf32>
    "tpu.trace_stop"() : () -> ()
    %cst_16 = arith.constant 0.353553385 : f32
    %37 = vector.broadcast %cst_16 : f32 to vector<2x8x8xf32>
    %38 = arith.mulf %36, %37 : vector<2x8x8xf32>
    %39 = arith.maximumf %17, %24 : vector<2x8x8xf32>
    %40 = arith.maximumf %39, %31 : vector<2x8x8xf32>
    %41 = arith.maximumf %40, %38 : vector<2x8x8xf32>
    %42 = arith.subf %17, %41 : vector<2x8x8xf32>
    %43 = math.exp %42 : vector<2x8x8xf32>
    %44 = arith.subf %24, %41 : vector<2x8x8xf32>
    %45 = math.exp %44 : vector<2x8x8xf32>
    %46 = arith.addf %43, %45 : vector<2x8x8xf32>
    %47 = arith.subf %31, %41 : vector<2x8x8xf32>
    %48 = math.exp %47 : vector<2x8x8xf32>
    %49 = arith.addf %46, %48 : vector<2x8x8xf32>
    %50 = arith.subf %38, %41 : vector<2x8x8xf32>
    %51 = math.exp %50 : vector<2x8x8xf32>
    %52 = arith.addf %49, %51 : vector<2x8x8xf32>
    %53 = tpu.reciprocal %52 {approx = true} : vector<2x8x8xf32> -> vector<2x8x8xf32>
    %54 = arith.mulf %52, %53 : vector<2x8x8xf32>
    %cst_17 = arith.constant 2.000000e+00 : f32
    %55 = vector.broadcast %cst_17 : f32 to vector<2x8x8xf32>
    %56 = arith.subf %55, %54 : vector<2x8x8xf32>
    %57 = arith.mulf %53, %56 : vector<2x8x8xf32>
    %58 = arith.mulf %43, %57 : vector<2x8x8xf32>
    %59 = vector.extract_strided_slice %10 {offsets = [0, 0], sizes = [16, 8], strides = [1, 1]} : vector<16x32xf32> to vector<16x8xf32>
    %60 = vector.shape_cast %59 : vector<16x8xf32> to vector<2x8x8xf32>
    "tpu.trace_start"() <{level = 10 : i32, message = "bqk,bkd->bqd"}> : () -> ()
    %cst_18 = arith.constant dense<0.000000e+00> : vector<2x8x8xf32>
    %61 = tpu.matmul %58, %60, %cst_18 {dimension_numbers = #tpu.dot_dimension_numbers<[2], [1], [1], [2], [0, 0, 0, 1, 1, 2], [0], [0]>} : vector<2x8x8xf32>, vector<2x8x8xf32>, vector<2x8x8xf32> -> vector<2x8x8xf32>
    "tpu.trace_stop"() : () -> ()
    %62 = vector.shape_cast %61 : vector<2x8x8xf32> to vector<16x8xf32>
    %63 = vector.extract_strided_slice %3 {offsets = [0, 0], sizes = [8, 32], strides = [1, 1]} : vector<32x32xf32> to vector<8x32xf32>
    %cst_19 = arith.constant dense<0.000000e+00> : vector<16x32xf32>
    %64 = tpu.matmul %62, %63, %cst_19 {dimension_numbers = #tpu.dot_dimension_numbers<[1], [0], [0], [1], [0, 0, 1, 1], [], []>} : vector<16x8xf32>, vector<8x32xf32>, vector<16x32xf32> -> vector<16x32xf32>
    %65 = arith.mulf %45, %57 : vector<2x8x8xf32>
    %66 = vector.extract_strided_slice %10 {offsets = [0, 8], sizes = [16, 8], strides = [1, 1]} : vector<16x32xf32> to vector<16x8xf32>
    %67 = vector.shape_cast %66 : vector<16x8xf32> to vector<2x8x8xf32>
    "tpu.trace_start"() <{level = 10 : i32, message = "bqk,bkd->bqd"}> : () -> ()
    %cst_20 = arith.constant dense<0.000000e+00> : vector<2x8x8xf32>
    %68 = tpu.matmul %65, %67, %cst_20 {dimension_numbers = #tpu.dot_dimension_numbers<[2], [1], [1], [2], [0, 0, 0, 1, 1, 2], [0], [0]>} : vector<2x8x8xf32>, vector<2x8x8xf32>, vector<2x8x8xf32> -> vector<2x8x8xf32>
    "tpu.trace_stop"() : () -> ()
    %69 = vector.shape_cast %68 : vector<2x8x8xf32> to vector<16x8xf32>
    %70 = vector.extract_strided_slice %3 {offsets = [8, 0], sizes = [8, 32], strides = [1, 1]} : vector<32x32xf32> to vector<8x32xf32>
    %cst_21 = arith.constant dense<0.000000e+00> : vector<16x32xf32>
    %71 = tpu.matmul %69, %70, %cst_21 {dimension_numbers = #tpu.dot_dimension_numbers<[1], [0], [0], [1], [0, 0, 1, 1], [], []>} : vector<16x8xf32>, vector<8x32xf32>, vector<16x32xf32> -> vector<16x32xf32>
    %72 = arith.addf %64, %71 : vector<16x32xf32>
    %73 = arith.mulf %48, %57 : vector<2x8x8xf32>
    %74 = vector.extract_strided_slice %10 {offsets = [0, 16], sizes = [16, 8], strides = [1, 1]} : vector<16x32xf32> to vector<16x8xf32>
    %75 = vector.shape_cast %74 : vector<16x8xf32> to vector<2x8x8xf32>
    "tpu.trace_start"() <{level = 10 : i32, message = "bqk,bkd->bqd"}> : () -> ()
    %cst_22 = arith.constant dense<0.000000e+00> : vector<2x8x8xf32>
    %76 = tpu.matmul %73, %75, %cst_22 {dimension_numbers = #tpu.dot_dimension_numbers<[2], [1], [1], [2], [0, 0, 0, 1, 1, 2], [0], [0]>} : vector<2x8x8xf32>, vector<2x8x8xf32>, vector<2x8x8xf32> -> vector<2x8x8xf32>
    "tpu.trace_stop"() : () -> ()
    %77 = vector.shape_cast %76 : vector<2x8x8xf32> to vector<16x8xf32>
    %78 = vector.extract_strided_slice %3 {offsets = [16, 0], sizes = [8, 32], strides = [1, 1]} : vector<32x32xf32> to vector<8x32xf32>
    %cst_23 = arith.constant dense<0.000000e+00> : vector<16x32xf32>
    %79 = tpu.matmul %77, %78, %cst_23 {dimension_numbers = #tpu.dot_dimension_numbers<[1], [0], [0], [1], [0, 0, 1, 1], [], []>} : vector<16x8xf32>, vector<8x32xf32>, vector<16x32xf32> -> vector<16x32xf32>
    %80 = arith.addf %72, %79 : vector<16x32xf32>
    %81 = arith.mulf %51, %57 : vector<2x8x8xf32>
    %82 = vector.extract_strided_slice %10 {offsets = [0, 24], sizes = [16, 8], strides = [1, 1]} : vector<16x32xf32> to vector<16x8xf32>
    %83 = vector.shape_cast %82 : vector<16x8xf32> to vector<2x8x8xf32>
    "tpu.trace_start"() <{level = 10 : i32, message = "bqk,bkd->bqd"}> : () -> ()
    %cst_24 = arith.constant dense<0.000000e+00> : vector<2x8x8xf32>
    %84 = tpu.matmul %81, %83, %cst_24 {dimension_numbers = #tpu.dot_dimension_numbers<[2], [1], [1], [2], [0, 0, 0, 1, 1, 2], [0], [0]>} : vector<2x8x8xf32>, vector<2x8x8xf32>, vector<2x8x8xf32> -> vector<2x8x8xf32>
    "tpu.trace_stop"() : () -> ()
    %85 = vector.shape_cast %84 : vector<2x8x8xf32> to vector<16x8xf32>
    %86 = vector.extract_strided_slice %3 {offsets = [24, 0], sizes = [8, 32], strides = [1, 1]} : vector<32x32xf32> to vector<8x32xf32>
    %cst_25 = arith.constant dense<0.000000e+00> : vector<16x32xf32>
    %87 = tpu.matmul %85, %86, %cst_25 {dimension_numbers = #tpu.dot_dimension_numbers<[1], [0], [0], [1], [0, 0, 1, 1], [], []>} : vector<16x8xf32>, vector<8x32xf32>, vector<16x32xf32> -> vector<16x32xf32>
    %88 = arith.addf %80, %87 : vector<16x32xf32>
    %89 = vector.broadcast %4 : vector<1x32xf32> to vector<16x32xf32>
    %90 = arith.addf %88, %89 : vector<16x32xf32>
    %91 = vector.shape_cast %90 : vector<16x32xf32> to vector<4x128xf32>
    %c0_26 = arith.constant 0 : index
    %c0_27 = arith.constant 0 : index
    %92 = vector.load %arg6[%c0_26, %c0_27] : memref<4x128xf32, #tpu.memory_space<vmem>>, vector<4x128xf32>
    tpu.vector_store %arg6[%c0_26, %c0_27], %91 {strides = array<i32>} : memref<4x128xf32, #tpu.memory_space<vmem>>, vector<4x128xf32>,
    return
  }
  func.func @transform_0(%arg0: i32) -> (i32, i32) {
    %c0_i32 = arith.constant 0 : i32
    %c0_i32_0 = arith.constant 0 : i32
    return %arg0, %c0_i32 : i32, i32
  }
  func.func @transform_1(%arg0: i32) -> (i32, i32) {
    %c0_i32 = arith.constant 0 : i32
    %c0_i32_0 = arith.constant 0 : i32
    %c0_i32_1 = arith.constant 0 : i32
    return %c0_i32, %c0_i32_0 : i32, i32
  }
  func.func @transform_2(%arg0: i32) -> (i32, i32) {
    %c0_i32 = arith.constant 0 : i32
    %c0_i32_0 = arith.constant 0 : i32
    %c0_i32_1 = arith.constant 0 : i32
    return %c0_i32, %c0_i32_0 : i32, i32
  }
  func.func @transform_3(%arg0: i32) -> (i32, i32) {
    %c0_i32 = arith.constant 0 : i32
    %c0_i32_0 = arith.constant 0 : i32
    %c0_i32_1 = arith.constant 0 : i32
    return %c0_i32, %c0_i32_0 : i32, i32
  }
  func.func @transform_4(%arg0: i32) -> (i32, i32) {
    %c0_i32 = arith.constant 0 : i32
    %c0_i32_0 = arith.constant 0 : i32
    %c0_i32_1 = arith.constant 0 : i32
    return %c0_i32, %c0_i32_0 : i32, i32
  }
  func.func @transform_5(%arg0: i32) -> (i32, i32) {
    %c0_i32 = arith.constant 0 : i32
    %c0_i32_0 = arith.constant 0 : i32
    return %arg0, %c0_i32 : i32, i32
  }
}

module attributes {stable_mosaic.version = 11 : i64} {
  func.func @_self_attention_kernel(%arg0: i32, %arg1: memref<48x32xf32, #tpu.memory_space<vmem>>, %arg2: memref<32x64xf32, #tpu.memory_space<vmem>>, %arg3: memref<1x32xf32, #tpu.memory_space<vmem>>, %arg4: memref<32x32xf32, #tpu.memory_space<vmem>>, %arg5: memref<1x32xf32, #tpu.memory_space<vmem>>, %arg6: memref<16x32xf32, #tpu.memory_space<vmem>>) attributes {dimension_semantics = [#tpu.dimension_semantics<parallel>], iteration_bounds = array<i64: 1>, scalar_prefetch = 0 : i64, scratch_operands = 0 : i64, tpu.core_type = #tpu.core_type<tc>, window_params = [{transform_indices = @transform_0, window_bounds = array<i64: 48, 32>}, {pipeline_mode = #tpu.pipeline_mode<synchronous>, transform_indices = @transform_1, window_bounds = array<i64: 32, 64>}, {pipeline_mode = #tpu.pipeline_mode<synchronous>, transform_indices = @transform_2, window_bounds = array<i64: 1, 32>}, {pipeline_mode = #tpu.pipeline_mode<synchronous>, transform_indices = @transform_3, window_bounds = array<i64: 32, 32>}, {pipeline_mode = #tpu.pipeline_mode<synchronous>, transform_indices = @transform_4, window_bounds = array<i64: 1, 32>}, {transform_indices = @transform_5, window_bounds = array<i64: 16, 32>}]} {
    %c0 = arith.constant 0 : index
    %c0_0 = arith.constant 0 : index
    %0 = vector.load %arg1[%c0, %c0_0] : memref<48x32xf32, #tpu.memory_space<vmem>>, vector<48x32xf32>
    %c0_1 = arith.constant 0 : index
    %c0_2 = arith.constant 0 : index
    %1 = vector.load %arg2[%c0_1, %c0_2] : memref<32x64xf32, #tpu.memory_space<vmem>>, vector<32x64xf32>
    %c0_3 = arith.constant 0 : index
    %c0_4 = arith.constant 0 : index
    %2 = vector.load %arg3[%c0_3, %c0_4] : memref<1x32xf32, #tpu.memory_space<vmem>>, vector<1x32xf32>
    %c0_5 = arith.constant 0 : index
    %c0_6 = arith.constant 0 : index
    %3 = vector.load %arg4[%c0_5, %c0_6] : memref<32x32xf32, #tpu.memory_space<vmem>>, vector<32x32xf32>
    %c0_7 = arith.constant 0 : index
    %c0_8 = arith.constant 0 : index
    %4 = vector.load %arg5[%c0_7, %c0_8] : memref<1x32xf32, #tpu.memory_space<vmem>>, vector<1x32xf32>
    %cst = arith.constant dense<0.000000e+00> : vector<48x64xf32>
    %5 = tpu.matmul %0, %1, %cst {dimension_numbers = #tpu.dot_dimension_numbers<[1], [0], [0], [1], [0, 0, 1, 1], [], []>} : vector<48x32xf32>, vector<32x64xf32>, vector<48x64xf32> -> vector<48x64xf32>
    %6 = vector.extract_strided_slice %5 {offsets = [0, 0], sizes = [16, 32], strides = [1, 1]} : vector<48x64xf32> to vector<16x32xf32>
    %7 = vector.broadcast %2 : vector<1x32xf32> to vector<16x32xf32>
    %8 = arith.addf %6, %7 : vector<16x32xf32>
    %9 = vector.extract_strided_slice %5 {offsets = [16, 32], sizes = [16, 32], strides = [1, 1]} : vector<48x64xf32> to vector<16x32xf32>
    %10 = vector.extract_strided_slice %5 {offsets = [32, 32], sizes = [16, 32], strides = [1, 1]} : vector<48x64xf32> to vector<16x32xf32>
    %11 = vector.extract_strided_slice %8 {offsets = [0, 0], sizes = [16, 8], strides = [1, 1]} : vector<16x32xf32> to vector<16x8xf32>
    %12 = vector.shape_cast %11 : vector<16x8xf32> to vector<2x8x8xf32>
    %13 = vector.extract_strided_slice %9 {offsets = [0, 0], sizes = [16, 8], strides = [1, 1]} : vector<16x32xf32> to vector<16x8xf32>
    %14 = vector.shape_cast %13 : vector<16x8xf32> to vector<2x8x8xf32>
    "tpu.trace_start"() <{level = 10 : i32, message = "bqd,bkd->bqk"}> : () -> ()
    %cst_9 = arith.constant dense<0.000000e+00> : vector<2x8x8xf32>
    %15 = tpu.matmul %12, %14, %cst_9 {dimension_numbers = #tpu.dot_dimension_numbers<[2], [2], [1], [1], [0, 0, 0, 1, 1, 1], [0], [0]>} : vector<2x8x8xf32>, vector<2x8x8xf32>, vector<2x8x8xf32> -> vector<2x8x8xf32>
    "tpu.trace_stop"() : () -> ()
    %cst_10 = arith.constant 0.353553385 : f32
    %16 = vector.broadcast %cst_10 : f32 to vector<2x8x8xf32>
    %17 = arith.mulf %15, %16 : vector<2x8x8xf32>
    %18 = vector.extract_strided_slice %8 {offsets = [0, 8], sizes = [16, 8], strides = [1, 1]} : vector<16x32xf32> to vector<16x8xf32>
    %19 = vector.shape_cast %18 : vector<16x8xf32> to vector<2x8x8xf32>
    %20 = vector.extract_strided_slice %9 {offsets = [0, 8], sizes = [16, 8], strides = [1, 1]} : vector<16x32xf32> to vector<16x8xf32>
    %21 = vector.shape_cast %20 : vector<16x8xf32> to vector<2x8x8xf32>
    "tpu.trace_start"() <{level = 10 : i32, message = "bqd,bkd->bqk"}> : () -> ()
    %cst_11 = arith.constant dense<0.000000e+00> : vector<2x8x8xf32>
    %22 = tpu.matmul %19, %21, %cst_11 {dimension_numbers = #tpu.dot_dimension_numbers<[2], [2], [1], [1], [0, 0, 0, 1, 1, 1], [0], [0]>} : vector<2x8x8xf32>, vector<2x8x8xf32>, vector<2x8x8xf32> -> vector<2x8x8xf32>
    "tpu.trace_stop"() : () -> ()
    %cst_12 = arith.constant 0.353553385 : f32
    %23 = vector.broadcast %cst_12 : f32 to vector<2x8x8xf32>
    %24 = arith.mulf %22, %23 : vector<2x8x8xf32>
    %25 = vector.extract_strided_slice %8 {offsets = [0, 16], sizes = [16, 8], strides = [1, 1]} : vector<16x32xf32> to vector<16x8xf32>
    %26 = vector.shape_cast %25 : vector<16x8xf32> to vector<2x8x8xf32>
    %27 = vector.extract_strided_slice %9 {offsets = [0, 16], sizes = [16, 8], strides = [1, 1]} : vector<16x32xf32> to vector<16x8xf32>
    %28 = vector.shape_cast %27 : vector<16x8xf32> to vector<2x8x8xf32>
    "tpu.trace_start"() <{level = 10 : i32, message = "bqd,bkd->bqk"}> : () -> ()
    %cst_13 = arith.constant dense<0.000000e+00> : vector<2x8x8xf32>
    %29 = tpu.matmul %26, %28, %cst_13 {dimension_numbers = #tpu.dot_dimension_numbers<[2], [2], [1], [1], [0, 0, 0, 1, 1, 1], [0], [0]>} : vector<2x8x8xf32>, vector<2x8x8xf32>, vector<2x8x8xf32> -> vector<2x8x8xf32>
    "tpu.trace_stop"() : () -> ()
    %cst_14 = arith.constant 0.353553385 : f32
    %30 = vector.broadcast %cst_14 : f32 to vector<2x8x8xf32>
    %31 = arith.mulf %29, %30 : vector<2x8x8xf32>
    %32 = vector.extract_strided_slice %8 {offsets = [0, 24], sizes = [16, 8], strides = [1, 1]} : vector<16x32xf32> to vector<16x8xf32>
    %33 = vector.shape_cast %32 : vector<16x8xf32> to vector<2x8x8xf32>
    %34 = vector.extract_strided_slice %9 {offsets = [0, 24], sizes = [16, 8], strides = [1, 1]} : vector<16x32xf32> to vector<16x8xf32>
    %35 = vector.shape_cast %34 : vector<16x8xf32> to vector<2x8x8xf32>
    "tpu.trace_start"() <{level = 10 : i32, message = "bqd,bkd->bqk"}> : () -> ()
    %cst_15 = arith.constant dense<0.000000e+00> : vector<2x8x8xf32>
    %36 = tpu.matmul %33, %35, %cst_15 {dimension_numbers = #tpu.dot_dimension_numbers<[2], [2], [1], [1], [0, 0, 0, 1, 1, 1], [0], [0]>} : vector<2x8x8xf32>, vector<2x8x8xf32>, vector<2x8x8xf32> -> vector<2x8x8xf32>
    "tpu.trace_stop"() : () -> ()
    %cst_16 = arith.constant 0.353553385 : f32
    %37 = vector.broadcast %cst_16 : f32 to vector<2x8x8xf32>
    %38 = arith.mulf %36, %37 : vector<2x8x8xf32>
    %39 = arith.maximumf %17, %24 : vector<2x8x8xf32>
    %40 = arith.maximumf %39, %31 : vector<2x8x8xf32>
    %41 = arith.maximumf %40, %38 : vector<2x8x8xf32>
    %42 = arith.subf %17, %41 : vector<2x8x8xf32>
    %43 = math.exp %42 : vector<2x8x8xf32>
    %44 = arith.subf %24, %41 : vector<2x8x8xf32>
    %45 = math.exp %44 : vector<2x8x8xf32>
    %46 = arith.addf %43, %45 : vector<2x8x8xf32>
    %47 = arith.subf %31, %41 : vector<2x8x8xf32>
    %48 = math.exp %47 : vector<2x8x8xf32>
    %49 = arith.addf %46, %48 : vector<2x8x8xf32>
    %50 = arith.subf %38, %41 : vector<2x8x8xf32>
    %51 = math.exp %50 : vector<2x8x8xf32>
    %52 = arith.addf %49, %51 : vector<2x8x8xf32>
    %53 = tpu.reciprocal %52 {approx = true} : vector<2x8x8xf32> -> vector<2x8x8xf32>
    %54 = arith.mulf %52, %53 : vector<2x8x8xf32>
    %cst_17 = arith.constant 2.000000e+00 : f32
    %55 = vector.broadcast %cst_17 : f32 to vector<2x8x8xf32>
    %56 = arith.subf %55, %54 : vector<2x8x8xf32>
    %57 = arith.mulf %53, %56 : vector<2x8x8xf32>
    %58 = arith.mulf %43, %57 : vector<2x8x8xf32>
    %59 = vector.extract_strided_slice %10 {offsets = [0, 0], sizes = [16, 8], strides = [1, 1]} : vector<16x32xf32> to vector<16x8xf32>
    %60 = vector.shape_cast %59 : vector<16x8xf32> to vector<2x8x8xf32>
    "tpu.trace_start"() <{level = 10 : i32, message = "bqk,bkd->bqd"}> : () -> ()
    %cst_18 = arith.constant dense<0.000000e+00> : vector<2x8x8xf32>
    %61 = tpu.matmul %58, %60, %cst_18 {dimension_numbers = #tpu.dot_dimension_numbers<[2], [1], [1], [2], [0, 0, 0, 1, 1, 2], [0], [0]>} : vector<2x8x8xf32>, vector<2x8x8xf32>, vector<2x8x8xf32> -> vector<2x8x8xf32>
    "tpu.trace_stop"() : () -> ()
    %62 = vector.shape_cast %61 : vector<2x8x8xf32> to vector<16x8xf32>
    %63 = vector.extract_strided_slice %3 {offsets = [0, 0], sizes = [8, 32], strides = [1, 1]} : vector<32x32xf32> to vector<8x32xf32>
    %cst_19 = arith.constant dense<0.000000e+00> : vector<16x32xf32>
    %64 = tpu.matmul %62, %63, %cst_19 {dimension_numbers = #tpu.dot_dimension_numbers<[1], [0], [0], [1], [0, 0, 1, 1], [], []>} : vector<16x8xf32>, vector<8x32xf32>, vector<16x32xf32> -> vector<16x32xf32>
    %65 = arith.mulf %45, %57 : vector<2x8x8xf32>
    %66 = vector.extract_strided_slice %10 {offsets = [0, 8], sizes = [16, 8], strides = [1, 1]} : vector<16x32xf32> to vector<16x8xf32>
    %67 = vector.shape_cast %66 : vector<16x8xf32> to vector<2x8x8xf32>
    "tpu.trace_start"() <{level = 10 : i32, message = "bqk,bkd->bqd"}> : () -> ()
    %cst_20 = arith.constant dense<0.000000e+00> : vector<2x8x8xf32>
    %68 = tpu.matmul %65, %67, %cst_20 {dimension_numbers = #tpu.dot_dimension_numbers<[2], [1], [1], [2], [0, 0, 0, 1, 1, 2], [0], [0]>} : vector<2x8x8xf32>, vector<2x8x8xf32>, vector<2x8x8xf32> -> vector<2x8x8xf32>
    "tpu.trace_stop"() : () -> ()
    %69 = vector.shape_cast %68 : vector<2x8x8xf32> to vector<16x8xf32>
    %70 = vector.extract_strided_slice %3 {offsets = [8, 0], sizes = [8, 32], strides = [1, 1]} : vector<32x32xf32> to vector<8x32xf32>
    %cst_21 = arith.constant dense<0.000000e+00> : vector<16x32xf32>
    %71 = tpu.matmul %69, %70, %cst_21 {dimension_numbers = #tpu.dot_dimension_numbers<[1], [0], [0], [1], [0, 0, 1, 1], [], []>} : vector<16x8xf32>, vector<8x32xf32>, vector<16x32xf32> -> vector<16x32xf32>
    %72 = arith.addf %64, %71 : vector<16x32xf32>
    %73 = arith.mulf %48, %57 : vector<2x8x8xf32>
    %74 = vector.extract_strided_slice %10 {offsets = [0, 16], sizes = [16, 8], strides = [1, 1]} : vector<16x32xf32> to vector<16x8xf32>
    %75 = vector.shape_cast %74 : vector<16x8xf32> to vector<2x8x8xf32>
    "tpu.trace_start"() <{level = 10 : i32, message = "bqk,bkd->bqd"}> : () -> ()
    %cst_22 = arith.constant dense<0.000000e+00> : vector<2x8x8xf32>
    %76 = tpu.matmul %73, %75, %cst_22 {dimension_numbers = #tpu.dot_dimension_numbers<[2], [1], [1], [2], [0, 0, 0, 1, 1, 2], [0], [0]>} : vector<2x8x8xf32>, vector<2x8x8xf32>, vector<2x8x8xf32> -> vector<2x8x8xf32>
    "tpu.trace_stop"() : () -> ()
    %77 = vector.shape_cast %76 : vector<2x8x8xf32> to vector<16x8xf32>
    %78 = vector.extract_strided_slice %3 {offsets = [16, 0], sizes = [8, 32], strides = [1, 1]} : vector<32x32xf32> to vector<8x32xf32>
    %cst_23 = arith.constant dense<0.000000e+00> : vector<16x32xf32>
    %79 = tpu.matmul %77, %78, %cst_23 {dimension_numbers = #tpu.dot_dimension_numbers<[1], [0], [0], [1], [0, 0, 1, 1], [], []>} : vector<16x8xf32>, vector<8x32xf32>, vector<16x32xf32> -> vector<16x32xf32>
    %80 = arith.addf %72, %79 : vector<16x32xf32>
    %81 = arith.mulf %51, %57 : vector<2x8x8xf32>
    %82 = vector.extract_strided_slice %10 {offsets = [0, 24], sizes = [16, 8], strides = [1, 1]} : vector<16x32xf32> to vector<16x8xf32>
    %83 = vector.shape_cast %82 : vector<16x8xf32> to vector<2x8x8xf32>
    "tpu.trace_start"() <{level = 10 : i32, message = "bqk,bkd->bqd"}> : () -> ()
    %cst_24 = arith.constant dense<0.000000e+00> : vector<2x8x8xf32>
    %84 = tpu.matmul %81, %83, %cst_24 {dimension_numbers = #tpu.dot_dimension_numbers<[2], [1], [1], [2], [0, 0, 0, 1, 1, 2], [0], [0]>} : vector<2x8x8xf32>, vector<2x8x8xf32>, vector<2x8x8xf32> -> vector<2x8x8xf32>
    "tpu.trace_stop"() : () -> ()
    %85 = vector.shape_cast %84 : vector<2x8x8xf32> to vector<16x8xf32>
    %86 = vector.extract_strided_slice %3 {offsets = [24, 0], sizes = [8, 32], strides = [1, 1]} : vector<32x32xf32> to vector<8x32xf32>
    %cst_25 = arith.constant dense<0.000000e+00> : vector<16x32xf32>
    %87 = tpu.matmul %85, %86, %cst_25 {dimension_numbers = #tpu.dot_dimension_numbers<[1], [0], [0], [1], [0, 0, 1, 1], [], []>} : vector<16x8xf32>, vector<8x32xf32>, vector<16x32xf32> -> vector<16x32xf32>
    %88 = arith.addf %80, %87 : vector<16x32xf32>
    %89 = vector.broadcast %4 : vector<1x32xf32> to vector<16x32xf32>
    %90 = arith.addf %88, %89 : vector<16x32xf32>
    %c0_26 = arith.constant 0 : index
    %c0_27 = arith.constant 0 : index
    %91 = vector.load %arg6[%c0_26, %c0_27] : memref<16x32xf32, #tpu.memory_space<vmem>>, vector<16x32xf32>
    tpu.vector_store %arg6[%c0_26, %c0_27], %90 {strides = array<i32>} : memref<16x32xf32, #tpu.memory_space<vmem>>, vector<16x32xf32>,
    return
  }
  func.func @transform_0(%arg0: i32) -> (i32, i32) {
    %c0_i32 = arith.constant 0 : i32
    %c0_i32_0 = arith.constant 0 : i32
    return %arg0, %c0_i32 : i32, i32
  }
  func.func @transform_1(%arg0: i32) -> (i32, i32) {
    %c0_i32 = arith.constant 0 : i32
    %c0_i32_0 = arith.constant 0 : i32
    %c0_i32_1 = arith.constant 0 : i32
    return %c0_i32, %c0_i32_0 : i32, i32
  }
  func.func @transform_2(%arg0: i32) -> (i32, i32) {
    %c0_i32 = arith.constant 0 : i32
    %c0_i32_0 = arith.constant 0 : i32
    %c0_i32_1 = arith.constant 0 : i32
    return %c0_i32, %c0_i32_0 : i32, i32
  }
  func.func @transform_3(%arg0: i32) -> (i32, i32) {
    %c0_i32 = arith.constant 0 : i32
    %c0_i32_0 = arith.constant 0 : i32
    %c0_i32_1 = arith.constant 0 : i32
    return %c0_i32, %c0_i32_0 : i32, i32
  }
  func.func @transform_4(%arg0: i32) -> (i32, i32) {
    %c0_i32 = arith.constant 0 : i32
    %c0_i32_0 = arith.constant 0 : i32
    %c0_i32_1 = arith.constant 0 : i32
    return %c0_i32, %c0_i32_0 : i32, i32
  }
  func.func @transform_5(%arg0: i32) -> (i32, i32) {
    %c0_i32 = arith.constant 0 : i32
    %c0_i32_0 = arith.constant 0 : i32
    return %arg0, %c0_i32 : i32, i32
  }
}

</mosaic_0001>

<bundles_post_ra>
// kernel: tpu_custom_call.1
= control target key start
LH: loop header
LB: loop body
LE: loop exit
PB: predicated region body
PF: predicated region fallthrough
CT: control target
= control target key end

     0   :  { %vm37_vm0 = vcmask 261120   ;;  %s2257_s0 = inlined_call_operand.vmem [shape: f32[48,32], index: 0, kind: input, shape index: {}]   ;;  %s2258_s1 = inlined_call_operand.vmem [shape: f32[32,64], index: 1, kind: input, shape index: {}]   ;;  %s2259_s2 = inlined_call_operand.vmem [shape: f32[1,32], index: 2, kind: input, shape index: {}]   ;;  %s2260_s3 = inlined_call_operand.vmem [shape: f32[32,32], index: 3, kind: input, shape index: {}]   ;;  %s2261_s4 = inlined_call_operand.vmem [shape: f32[1,32], index: 4, kind: input, shape index: {}]   ;;  %s2262_s5 = inlined_call_operand.hbm [shape: f32[16,32], index: 5, kind: output, shape index: {}]  }
   0x1   :  { %v30_v0 = vld [vmem:[%s2258_s1 + $0x18] sm:$0xff]  ;;  %v29_v1 = vld [vmem:[%s2258_s1 + $0x10] sm:$0xff]  ;;  %v21_v2 = vld [vmem:[%s2257_s0] sm:$0xff] }
   0x2   :  { %1902 = vmatprep.subr.mxu0 %v30_v0  ;;  %v28_v3 = vld [vmem:[%s2258_s1 + $0x8] sm:$0xff]  ;;  %1910 = vmatprep.mubr.msk.f32.mxu0 %vm37_vm0, %v21_v2 }
   0x3   :  { %1903 = vmatpush3.msra.mxu0 %v30_v0 }
   0x4   :  { %1904 = vmatprep.subr.mxu0 %v29_v1 }
   0x5   :  { %10 = vsyncpa [#allocation3], 0  ;;  %1905 = vmatpush3.msra.mxu0 %v29_v1  ;;  %v27_v4 = vld [vmem:[%s2258_s1] sm:$0xff]  ;;  %v22_v5 = vld [vmem:[%s2257_s0 + $0x8] sm:$0xff]  ;;  %v2073_v10 = vmov 0.0   ;;  %vm2074_vm1 = vmmov 0  }
   0x6   :  { %1906 = vmatprep.subr.mxu0 %v28_v3  ;;  %v23_v6 = vld [vmem:[%s2257_s0 + $0x10] sm:$0xff]  ;;  %v24_v7 = vld [vmem:[%s2257_s0 + $0x18] sm:$0xff]  ;;  %v25_v8 = vld [vmem:[%s2257_s0 + $0x20] sm:$0xff]  ;;  %1919 = vmatprep.subr.mxu1 %v2073_v10  ;;  %s2076_s14 = smov 96   ;;  %s2077_s15 = smov 88   ;;  %vm162_vm2 = vcmask 64512  }
   0x7   :  { %1907 = vmatpush3.msra.mxu0 %v28_v3  ;;  %v26_v9 = vld [vmem:[%s2257_s0 + $0x28] sm:$0xff]  ;;  %1921 = vmatprep.mubr.msk.f32.mxu1 %vm2074_vm1, %v2073_v10  ;;  %v1814_v12 = vld [vmem:[%s2259_s2] ss:$0 sm:$0xff]  ;;  %s2075_s0 = smov 120   ;;  %s2078_s16 = smov 80  }
   0x8   :  { %1908 = vmatprep.subr.mxu0 %v27_v4  ;;  %s2079_s17 = smov 112   ;;  %s2080_s2 = smov 72  }
   0x9   :  { %1909 = vmatpush3.msra.mxu0 %v27_v4  ;;  %s2081_s18 = smov 104   ;;  %s2082_s29 = smov [#allocation2]  }
   0xa   :  { %1911 = vmatmul.mubr.msk.f32.vlgmr.msra.gmra.mxu0 %vm37_vm0, %v22_v5  ;;  %1939 = vmatprep.subr.mxu0 %v2073_v10  ;;  %s1797_s30 = sshll.u32 %s2082_s29, 4  ;;  %s1798_s30 = int_to_ptr.vmem [resolvable:$true] %s1797_s30 }
   0xb   :  { %1913 = vmatprep.mubr.msk.f32.mxu0 %vm37_vm0, %v23_v6  ;;  %p2056_p1 = scmp.lt.s32.totalorder %s1798_s30, %s1798_s30 }
   0xe   :  { %1914 = vmatmul.mubr.msk.f32.gmra.mxu0 %vm37_vm0, %v24_v7 }
   0xf   :  { %1916 = vmatprep.mubr.msk.f32.mxu0 %vm37_vm0, %v25_v8 }
  0x12   :  { %1917 = vmatmul.mubr.msk.f32.gmra.mxu0 %vm37_vm0, %v26_v9 }
  0x13   :  { %1941 = vmatprep.mubr.msk.f32.mxu0 %vm2074_vm1, %v2073_v10 }
  0xca   :  { %v1912_v11 = vpop.f32.mrf.mxu0 }
  0xcb   :  { %v158_v17 = vadd.f32 %v1912_v11, %v1814_v12 }
  0xcc   :  { %v122_v13 = vpop.f32.mrf.mxu0 }
  0xcd   :  { %v157_v14 = vadd.f32 %v1814_v12, %v122_v13 }
  0xce   :  { %v1915_v15 = vpop.f32.mrf.mxu0 }
  0xcf   :  { %318 = vrot.lane.b32.xlu1 %v157_v14, %s2075_s0 }
  0xd0   :  { %v132_v16 = vpop.f32.mrf.mxu0 }
  0xd1   :  { %160 = vrot.lane.b32.xlu0 %v132_v16, %s2076_s14 }
  0xd2   :  { %v1918_v18 = vpop.f32.mrf.mxu0 }
  0xd3   :  { %396 = vrot.lane.b32.xlu1 %v158_v17, %s2075_s0 }
  0xd4   :  { %v142_v19 = vpop.f32.mrf.mxu0 }
  0xd5   :  { %239 = vrot.lane.b32.xlu0 %v1915_v15, %s2076_s14 }
  0xd7   :  { %320 = vrot.lane.b32.xlu1 %v132_v16, %s2077_s15 }
  0xd9   :  { %398 = vrot.lane.b32.xlu0 %v1915_v15, %s2077_s15 }
  0xdb   :  { %556 = vrot.lane.b32.xlu1 %v1915_v15, %s2078_s16 }
  0xdd   :  { %476 = vrot.lane.b32.xlu0 %v157_v14, %s2079_s17 }
  0xdf   :  { %554 = vrot.lane.b32.xlu1 %v158_v17, %s2079_s17 }
  0xe1   :  { %478 = vrot.lane.b32.xlu0 %v132_v16, %s2078_s16 }
  0xe3   :  { %714 = vrot.lane.b32.xlu1 %v1915_v15, %s2080_s2 }
  0xe5   :  { %636 = vrot.lane.b32.xlu0 %v132_v16, %s2080_s2 }
  0xe7   :  { %712 = vrot.lane.b32.xlu1 %v158_v17, %s2081_s18 }
  0xe9   :  { %634 = vrot.lane.b32.xlu0 %v157_v14, %s2081_s18 }
  0xeb   :  { %916 = vrot.lane.b32.xlu1 %v1918_v18, %s2076_s14 }
  0xed   :  { %839 = vrot.lane.b32.xlu0 %v142_v19, %s2076_s14 }
  0xef   :  { %1070 = vrot.lane.b32.xlu1 %v1918_v18, %s2077_s15 }
  0xf1   :  { %994 = vrot.lane.b32.xlu0 %v142_v19, %s2077_s15 }
  0xf3   :  { %1386 = vrot.lane.b32.xlu1 %v1918_v18, %s2078_s16 }
  0xf5   :  { %1310 = vrot.lane.b32.xlu0 %v142_v19, %s2078_s16 }
  0xf7   :  { %1623 = vrot.lane.b32.xlu1 %v1918_v18, %s2080_s2 }
  0xf9   :  { %1547 = vrot.lane.b32.xlu0 %v142_v19, %s2080_s2 }
 0x141   :  { %v319_v20 = vpop.permute.xlu1 %318 }
 0x143   :  { %v161_v21 = vpop.permute.xlu0 %160 }
 0x144   :  { %1920 = vmatpush3.xpose.msk.msra.mxu1 %vm162_vm2, %v161_v21 }
 0x145   :  { %v397_v22 = vpop.permute.xlu1 %396  ;;  %1924 = vmatprep.subr.mxu1 %v2073_v10 }
 0x147   :  { %1922 = vmatmul.mubr.msk.f32.vlgmr.msra.gmra.mxu1 %vm162_vm2, %v157_v14  ;;  %v240_v23 = vpop.permute.xlu0 %239 }
 0x148   :  { %1925 = vmatpush3.xpose.msk.msra.mxu1 %vm162_vm2, %v240_v23  ;;  %1926 = vmatprep.mubr.msk.f32.mxu1 %vm2074_vm1, %v2073_v10 }
 0x149   :  { %v321_v24 = vpop.permute.xlu1 %320  ;;  %1929 = vmatprep.subr.mxu1 %v2073_v10 }
 0x14b   :  { %1927 = vmatmul.mubr.msk.f32.vlgmr.msra.gmra.mxu1 %vm162_vm2, %v158_v17  ;;  %v399_v25 = vpop.permute.xlu0 %398 }
 0x14c   :  { %1930 = vmatpush3.xpose.msk.msra.mxu1 %vm162_vm2, %v321_v24  ;;  %1931 = vmatprep.mubr.msk.f32.mxu1 %vm2074_vm1, %v2073_v10 }
 0x14d   :  { %v557_v26 = vpop.permute.xlu1 %556  ;;  %1934 = vmatprep.subr.mxu1 %v2073_v10 }
 0x14f   :  { %1932 = vmatmul.mubr.msk.f32.vlgmr.msra.gmra.mxu1 %vm162_vm2, %v319_v20  ;;  %v477_v27 = vpop.permute.xlu0 %476 }
 0x150   :  { %1935 = vmatpush3.xpose.msk.msra.mxu1 %vm162_vm2, %v399_v25  ;;  %1936 = vmatprep.mubr.msk.f32.mxu1 %vm2074_vm1, %v2073_v10 }
 0x151   :  { %v555_v28 = vpop.permute.xlu1 %554  ;;  %1944 = vmatprep.subr.mxu1 %v2073_v10 }
 0x153   :  { %1937 = vmatmul.mubr.msk.f32.vlgmr.msra.gmra.mxu1 %vm162_vm2, %v397_v22  ;;  %v479_v29 = vpop.permute.xlu0 %478 }
 0x154   :  { %1940 = vmatpush3.xpose.msk.msra.mxu0 %vm162_vm2, %v479_v29  ;;  %1945 = vmatpush3.xpose.msk.msra.mxu1 %vm162_vm2, %v557_v26 }
 0x155   :  { %v715_v30 = vpop.permute.xlu1 %714  ;;  %1946 = vmatprep.mubr.msk.f32.mxu1 %vm2074_vm1, %v2073_v10  ;;  %1949 = vmatprep.subr.mxu0 %v2073_v10 }
 0x156   :  { %1954 = vmatprep.subr.mxu1 %v2073_v10 }
 0x157   :  { %1942 = vmatmul.mubr.msk.f32.vlgmr.msra.gmra.mxu0 %vm162_vm2, %v477_v27  ;;  %1947 = vmatmul.mubr.msk.f32.vlgmr.msra.gmra.mxu1 %vm162_vm2, %v555_v28  ;;  %v637_v31 = vpop.permute.xlu0 %636 }
 0x158   :  { %1950 = vmatpush3.xpose.msk.msra.mxu0 %vm162_vm2, %v637_v31  ;;  %1955 = vmatpush3.xpose.msk.msra.mxu1 %vm162_vm2, %v715_v30 }
 0x159   :  { %v713_v32 = vpop.permute.xlu1 %712  ;;  %1956 = vmatprep.mubr.msk.f32.mxu1 %vm2074_vm1, %v2073_v10  ;;  %1951 = vmatprep.mubr.msk.f32.mxu0 %vm2074_vm1, %v2073_v10 }
 0x15a   :  { %1964 = vmatprep.subr.mxu1 %v2073_v10  ;;  %1959 = vmatprep.subr.mxu0 %v2073_v10 }
 0x15b   :  { %1957 = vmatmul.mubr.msk.f32.vlgmr.msra.gmra.mxu1 %vm162_vm2, %v713_v32  ;;  %v635_v33 = vpop.permute.xlu0 %634 }
 0x15c   :  { %1952 = vmatmul.mubr.msk.f32.vlgmr.msra.gmra.mxu0 %vm162_vm2, %v635_v33  ;;  %1966 = vmatprep.mubr.msk.f32.mxu1 %vm2074_vm1, %v2073_v10 }
 0x15d   :  { %1961 = vmatprep.mubr.msk.f32.mxu0 %vm2074_vm1, %v2073_v10  ;;  %v917_v34 = vpop.permute.xlu1 %916 }
 0x15e   :  { %1965 = vmatpush3.msra.mxu1 %v917_v34 }
 0x15f   :  { %v840_v35 = vpop.permute.xlu0 %839  ;;  %1974 = vmatprep.subr.mxu1 %v2073_v10 }
 0x160   :  { %1960 = vmatpush3.msra.mxu0 %v840_v35 }
 0x161   :  { %1969 = vmatprep.subr.mxu0 %v2073_v10 }
 0x207   :  { %v234_v36 = vpop.f32.mrf.mxu1 }
 0x208   :  { %v316_v50 = vmul.f32 0.35355338, %v234_v36 }
 0x209   :  { %v1923_v37 = vpop.f32.mrf.mxu1 }
 0x20b   :  { %v312_v38 = vpop.f32.mrf.mxu1 }
 0x20c   :  { %v317_v48 = vmul.f32 0.35355338, %v312_v38 }
 0x20d   :  { %v1928_v39 = vpop.f32.mrf.mxu1 }
 0x20f   :  { %v392_v40 = vpop.f32.mrf.mxu1 }
 0x210   :  { %v474_v45 = vmul.f32 0.35355338, %v392_v40 }
 0x211   :  { %v1933_v41 = vpop.f32.mrf.mxu1 }
 0x212   :  { %v792_v55 = vmax.f32 %v316_v50, %v474_v45 }
 0x213   :  { %v470_v42 = vpop.f32.mrf.mxu1 }
 0x214   :  { %v475_v44 = vmul.f32 0.35355338, %v470_v42 }
 0x215   :  { %v1938_v43 = vpop.f32.mrf.mxu1 }
 0x216   :  { %v793_v54 = vmax.f32 %v317_v48, %v475_v44  ;;  %v1071_v43 = vpop.permute.xlu1 %1070 }
 0x217   :  { %v550_v46 = vpop.f32.mrf.mxu0  ;;  %v628_v47 = vpop.f32.mrf.mxu1 }
 0x218   :  { %v633_v49 = vmul.f32 0.35355338, %v628_v47  ;;  %v632_v51 = vmul.f32 0.35355338, %v550_v46 }
 0x219   :  { %v1943_v52 = vpop.f32.mrf.mxu0  ;;  %v1948_v53 = vpop.f32.mrf.mxu1 }
 0x21a   :  { %v795_v57 = vmax.f32 %v793_v54, %v633_v49  ;;  %v794_v60 = vmax.f32 %v792_v55, %v632_v51  ;;  %v33_v52 = vld [vmem:[%s2260_s3 + $0x8] sm:$0xff] }
 0x21b   :  { %v786_v56 = vpop.f32.mrf.mxu1 }
 0x21c   :  { %v791_v58 = vmul.f32 0.35355338, %v786_v56  ;;  %v708_v59 = vpop.f32.mrf.mxu0 }
 0x21d   :  { %v790_v61 = vmul.f32 0.35355338, %v708_v59  ;;  %v1958_v62 = vpop.f32.mrf.mxu1 }
 0x21e   :  { %v797_v63 = vmax.f32 %v795_v57, %v791_v58  ;;  %v1953_v0 = vpop.f32.mrf.mxu0 }
 0x21f   :  { %v796_v1 = vmax.f32 %v794_v60, %v790_v61  ;;  %v34_v0 = vld [vmem:[%s2260_s3 + $0x10] sm:$0xff] }
 0x220   :  { %v799_v2 = vsub.f32 %v317_v48, %v797_v63  ;;  %v805_v3 = vsub.f32 %v475_v44, %v797_v63  ;;  %v813_v4 = vsub.f32 %v633_v49, %v797_v63  ;;  %v821_v5 = vsub.f32 %v791_v58, %v797_v63  ;;  %v995_v49 = vpop.permute.xlu0 %994  ;;  %v1387_v58 = vpop.permute.xlu1 %1386 }
 0x221   :  { %v798_v6 = vsub.f32 %v316_v50, %v796_v1  ;;  %v804_v7 = vsub.f32 %v474_v45, %v796_v1  ;;  %v812_v13 = vsub.f32 %v632_v51, %v796_v1  ;;  %v820_v16 = vsub.f32 %v790_v61, %v796_v1  ;;  %v32_v51 = vld [vmem:[%s2260_s3] sm:$0xff] }
 0x222   :  { %v802_v8 = vmul.f32 1.442695, %v799_v2  ;;  %v808_v9 = vmul.f32 1.442695, %v805_v3  ;;  %v816_v11 = vmul.f32 1.442695, %v813_v4 }
 0x223   :  { %v824_v12 = vmul.f32 1.442695, %v821_v5  ;;  %v800_v14 = vmul.f32 1.442695, %v798_v6  ;;  %v806_v15 = vmul.f32 1.442695, %v804_v7 }
 0x224   :  { %2031 = vpow2.f32 %v802_v8  ;;  %v814_v17 = vmul.f32 1.442695, %v812_v13  ;;  %v822_v18 = vmul.f32 1.442695, %v820_v16  ;;  %v1311_v55 = vpop.permute.xlu0 %1310 }
 0x225   :  { %2033 = vpow2.f32 %v808_v9 }
 0x226   :  { %2035 = vpow2.f32 %v816_v11 }
 0x227   :  { %2037 = vpow2.f32 %v824_v12  ;;  %v1624_v12 = vpop.permute.xlu1 %1623 }
 0x228   :  { %2039 = vpow2.f32 %v800_v14  ;;  %v1548_v62 = vpop.permute.xlu0 %1547 }
 0x229   :  { %2041 = vpow2.f32 %v806_v15  ;;  %v35_v15 = vld [vmem:[%s2260_s3 + $0x18] sm:$0xff]  ;;  %s2051_s3 = scalar_lea.vmem %s1798_s30, 256 }
 0x22a   :  { %2043 = vpow2.f32 %v814_v17  ;;  %p2052_p0 = scmp.ne.s32.totalorder %s1798_s30, %s2051_s3  ;;  %p2057_p2 = scmp.lt.s32.totalorder %s2051_s3, %s2051_s3 }
 0x22b   :  { %2045 = vpow2.f32 %v822_v18 }
 0x22c   :  { %p2058_p3 = por %p2057_p2, %p2056_p1 }
 0x22e   :  { %p2059_p4 = pnand %p2058_p3, %p2052_p0 }
 0x231   :  { %v2032_v19 = vpop.eup %2031 }
 0x232   :  { %v2034_v20 = vpop.eup %2033 }
 0x233   :  { %v2036_v21 = vpop.eup %2035  ;;  %v811_v22 = vadd.f32 %v2034_v20, %v2032_v19 }
 0x234   :  { %v2038_v23 = vpop.eup %2037 }
 0x235   :  { %v2040_v24 = vpop.eup %2039  ;;  %v819_v25 = vadd.f32 %v2036_v21, %v811_v22 }
 0x236   :  { %v2042_v26 = vpop.eup %2041 }
 0x237   :  { %v827_v27 = vadd.f32 %v2038_v23, %v819_v25  ;;  %v810_v28 = vadd.f32 %v2042_v26, %v2040_v24  ;;  %v2044_v29 = vpop.eup %2043 }
 0x238   :  { %v2046_v31 = vpop.eup %2045 }
 0x239   :  { %2047 = vrcp.f32 %v827_v27  ;;  %v818_v30 = vadd.f32 %v2044_v29, %v810_v28 }
 0x23b   :  { %v826_v32 = vadd.f32 %v2046_v31, %v818_v30 }
 0x23d   :  { %2049 = vrcp.f32 %v826_v32 }
 0x246   :  { %v2048_v33 = vpop.eup %2047 }
 0x247   :  { %v831_v34 = vmul.f32 %v2048_v33, %v827_v27 }
 0x249   :  { %v833_v35 = vsub.f32 2.0, %v831_v34 }
 0x24a   :  { %v2050_v36 = vpop.eup %2049 }
 0x24b   :  { %v830_v37 = vmul.f32 %v2050_v36, %v826_v32  ;;  %v835_v38 = vmul.f32 %v2048_v33, %v833_v35 }
 0x24d   :  { %v832_v39 = vsub.f32 2.0, %v830_v37  ;;  %v837_v40 = vmul.f32 %v2032_v19, %v835_v38  ;;  %v1309_v41 = vmul.f32 %v2036_v21, %v835_v38  ;;  %v2202_v42 = vmul.f32 %v2038_v23, %v835_v38 }
 0x24e   :  { %v993_v46 = vmul.f32 %v2034_v20, %v835_v38 }
 0x24f   :  { %1967 = vmatmul.mubr.msk.f32.vlgmr.msra.gmra.mxu1 %vm162_vm2, %v837_v40  ;;  %v834_v44 = vmul.f32 %v2050_v36, %v832_v39 }
 0x250   :  { %1975 = vmatpush3.msra.mxu1 %v1071_v43  ;;  %1976 = vmatprep.mubr.msk.f32.mxu1 %vm2074_vm1, %v2073_v10 }
 0x251   :  { %v836_v45 = vmul.f32 %v2040_v24, %v834_v44  ;;  %v1308_v47 = vmul.f32 %v2044_v29, %v834_v44  ;;  %v1545_v48 = vmul.f32 %v2046_v31, %v834_v44  ;;  %v992_v50 = vmul.f32 %v2042_v26, %v834_v44  ;;  %1984 = vmatprep.subr.mxu1 %v32_v51 }
 0x253   :  { %1962 = vmatmul.mubr.msk.f32.vlgmr.msra.gmra.mxu0 %vm162_vm2, %v836_v45  ;;  %1977 = vmatmul.mubr.msk.f32.vlgmr.msra.gmra.mxu1 %vm162_vm2, %v993_v46 }
 0x254   :  { %1970 = vmatpush3.msra.mxu0 %v995_v49  ;;  %1971 = vmatprep.mubr.msk.f32.mxu0 %vm2074_vm1, %v2073_v10 }
 0x255   :  { %1985 = vmatpush3.msra.mxu1 %v32_v51  ;;  %1979 = vmatprep.subr.mxu0 %v33_v52 }
 0x256   :  { %1994 = vmatprep.subr.mxu1 %v2073_v10 }
 0x257   :  { %1972 = vmatmul.mubr.msk.f32.vlgmr.msra.gmra.mxu0 %vm162_vm2, %v992_v50 }
 0x258   :  { %1980 = vmatpush3.msra.mxu0 %v33_v52 }
 0x259   :  { %1989 = vmatprep.subr.mxu0 %v2073_v10 }
 0x30f   :  { %v988_v53 = vpop.f32.mrf.mxu1 }
 0x311   :  { %v1968_v54 = vpop.f32.mrf.mxu1 }
 0x313   :  { %v911_v56 = vpop.f32.mrf.mxu0  ;;  %v1142_v57 = vpop.f32.mrf.mxu1 }
 0x314   :  { %1986 = vmatprep.mubr.msk.f32.mxu1 %vm162_vm2, %v911_v56 }
 0x315   :  { %v1963_v59 = vpop.f32.mrf.mxu0  ;;  %1987 = vmatmul.mubr.msk.f32.vlgmr.msra.gmra.mxu1 %vm162_vm2, %v988_v53  ;;  %v1978_v60 = vpop.f32.mrf.mxu1 }
 0x316   :  { %1995 = vmatpush3.msra.mxu1 %v1387_v58  ;;  %1996 = vmatprep.mubr.msk.f32.mxu1 %vm2074_vm1, %v2073_v10 }
 0x317   :  { %v1066_v61 = vpop.f32.mrf.mxu0  ;;  %2004 = vmatprep.subr.mxu1 %v2073_v10 }
 0x318   :  { %1981 = vmatprep.mubr.msk.f32.mxu0 %vm162_vm2, %v1066_v61 }
 0x319   :  { %v1973_v63 = vpop.f32.mrf.mxu0  ;;  %1982 = vmatmul.mubr.msk.f32.vlgmr.msra.gmra.mxu0 %vm162_vm2, %v1142_v57  ;;  %1997 = vmatmul.mubr.msk.f32.vlgmr.msra.gmra.mxu1 %vm162_vm2, %v1309_v41 }
 0x31a   :  { %1990 = vmatpush3.msra.mxu0 %v1311_v55  ;;  %2005 = vmatpush3.msra.mxu1 %v1548_v62 }
 0x31b   :  { %1991 = vmatprep.mubr.msk.f32.mxu0 %vm2074_vm1, %v2073_v10  ;;  %2006 = vmatprep.mubr.msk.f32.mxu1 %vm2074_vm1, %v2073_v10 }
 0x31c   :  { %1999 = vmatprep.subr.mxu0 %v34_v0  ;;  %2014 = vmatprep.subr.mxu1 %v35_v15 }
 0x31d   :  { %1992 = vmatmul.mubr.msk.f32.vlgmr.msra.gmra.mxu0 %vm162_vm2, %v1308_v47  ;;  %2007 = vmatmul.mubr.msk.f32.vlgmr.msra.gmra.mxu1 %vm162_vm2, %v1545_v48 }
 0x31e   :  { %2000 = vmatpush3.msra.mxu0 %v34_v0  ;;  %2015 = vmatpush3.msra.mxu1 %v35_v15 }
 0x31f   :  { %2009 = vmatprep.subr.mxu0 %v2073_v10 }
 0x3d5   :  { %v1988_v1 = vpop.f32.mrf.mxu1 }
 0x3d7   :  { %v1299_v2 = vpop.f32.mrf.mxu1 }
 0x3d9   :  { %v1983_v3 = vpop.f32.mrf.mxu0  ;;  %v1458_v4 = vpop.f32.mrf.mxu1 }
 0x3da   :  { %v1305_v5 = vadd.f32 %v1988_v1, %v1983_v3 }
 0x3db   :  { %v1218_v6 = vpop.f32.mrf.mxu0  ;;  %v1998_v7 = vpop.f32.mrf.mxu1 }
 0x3dc   :  { %v1300_v8 = vadd.f32 %v1299_v2, %v1218_v6 }
 0x3dd   :  { %v1382_v9 = vpop.f32.mrf.mxu0  ;;  %v1619_v11 = vpop.f32.mrf.mxu1 }
 0x3de   :  { %2001 = vmatprep.mubr.msk.f32.mxu0 %vm162_vm2, %v1382_v9  ;;  %2016 = vmatprep.mubr.msk.f32.mxu1 %vm162_vm2, %v1619_v11 }
 0x3df   :  { %v1993_v13 = vpop.f32.mrf.mxu0  ;;  %2002 = vmatmul.mubr.msk.f32.vlgmr.msra.gmra.mxu0 %vm162_vm2, %v1458_v4  ;;  %v2008_v14 = vpop.f32.mrf.mxu1 }
 0x3e0   :  { %2010 = vmatpush3.msra.mxu0 %v1624_v12  ;;  %2011 = vmatprep.mubr.msk.f32.mxu0 %vm2074_vm1, %v2073_v10  ;;  %v1847_v10 = vld [vmem:[%s2261_s4] ss:$0 sm:$0xff] }
 0x3e3   :  { %2012 = vmatmul.mubr.msk.f32.vlgmr.msra.gmra.mxu0 %vm162_vm2, %v2202_v42 }
 0x49f   :  { %v2003_v16 = vpop.f32.mrf.mxu0 }
 0x4a0   :  { %v1544_v17 = vadd.f32 %v2003_v16, %v1305_v5 }
 0x4a1   :  { %v1534_v18 = vpop.f32.mrf.mxu0 }
 0x4a2   :  { %v1543_v19 = vadd.f32 %v1534_v18, %v1300_v8 }
 0x4a3   :  { %v1695_v20 = vpop.f32.mrf.mxu0 }
 0x4a4   :  { %2017 = vmatmul.mubr.msk.f32.vlgmr.msra.gmra.mxu1 %vm162_vm2, %v1695_v20 }
 0x4a5   :  { %v2013_v21 = vpop.f32.mrf.mxu0 }
 0x564   :  { %v2018_v22 = vpop.f32.mrf.mxu1 }
 0x565   :  { %v1781_v23 = vadd.f32 %v2018_v22, %v1544_v17 }
 0x566   :  { %v1771_v24 = vpop.f32.mrf.mxu1 }
 0x567   :  { %v1789_v25 = vadd.f32 %v1847_v10, %v1781_v23  ;;  %v1780_v26 = vadd.f32 %v1771_v24, %v1543_v19 }
 0x569   :  { %1791 = vst.msk [vmem:[#allocation2 + $0x8] sm:$0xff] %vm37_vm0, %v1789_v25  ;;  %v1788_v27 = vadd.f32 %v1847_v10, %v1780_v26 }
 0x56b   :  { %1790 = vst.msk [vmem:[#allocation2] sm:$0xff] %vm37_vm0, %v1788_v27 }
 0x56c   :  { %2062 = shalt.err (!%p2059_p4)
}
 0x56d   :  { %s2083_s4 = smov 128   ;;  %s2084_s6 = smov 8  }
 0x56e   :  { %1803 = dma.vmem_to_hbm [thread:$0]  %s1798_s30, 256, %s2262_s5, [#allocation3], %s2083_s4, %s2083_s4, %s2084_s6  }
 0x56f   :  { %2071 = dma.done.wait [#allocation3], 256  }
 0x570   :  { %2072 = vsyncadd [#allocation3], 4294967040 }
 0x571   :  { %1807 = vsyncpa [#allocation3], 1 }

</bundles_post_ra>
